<compile_context>
chip_gen: v6e
topology: v6e:2x2x1
jax: 0.10.0
libtpu: 0.0.40
codegen_flags: <defaults>
</compile_context>

<pallas_src>
import functools
import math

import numpy as np
import jax
import jax.numpy as jnp
from jax import lax
from jax.experimental import pallas as pl
from jax.experimental.pallas import tpu as pltpu


def build_pos_enc(max_len, d_model, dtype=jnp.float32):
    # Mirrors PositionalEncoding.build_pos_enc (returns (max_len, d_model); the PyTorch
    # unsqueeze/transpose only adds a singleton "batch" axis that we re-add via broadcasting).
    position = np.arange(max_len, dtype=np.float32)[:, None]
    div_term = np.exp(
        np.arange(0, d_model, 2, dtype=np.float32) * (-np.log(10000.0) / d_model)
    )
    pe = np.zeros((max_len, d_model), dtype=np.float32)
    pe[:, 0::2] = np.sin(position * div_term)
    pe[:, 1::2] = np.cos(position * div_term)
    return jnp.asarray(pe, dtype=dtype)


def init_positional_encoding(weight, bias, pe_table, compute_dtype=None):
    """One-time parameter prep (hoisted out of the per-call path).

    fc(cat([x, pe])) == x @ Wx + (pe @ Wp + b)
      wx      : transposed x-half of the Linear weight,        (D, D)
      pe_proj : pe-half projection of every table row + bias,  (max_len, D), f32
    On v5e/v6e, pass compute_dtype=jnp.bfloat16 (and feed bf16 x) to halve the dominant HBM read;
    accumulation stays f32 in-kernel via preferred_element_type.
    """
    D = weight.shape[0]
    wx = jnp.asarray(weight[:, :D].T)                                   # (D, D)
    if compute_dtype is not None:
        wx = wx.astype(compute_dtype)
    pe_proj = (
        pe_table.astype(jnp.float32) @ weight[:, D:].T.astype(jnp.float32)
        + bias.astype(jnp.float32)[None, :]
    )                                                                   # (max_len, D), bias folded
    return {"wx": wx, "pe_proj": pe_proj, "d_model": D}


def _round_up(x, m):
    return ((x + m - 1) // m) * m


def _pick_row_tile(R, group, num_t, D, itemsize, *, target_rows=2048, budget_bytes=20 << 20):
    """Row tile that (a) is sublane-aligned and covers whole pe rows, (b) fits a layout-aware
    VMEM budget (conservative for v7x's 64 MiB physical / 32 MiB scoped default), and (c) leaves
    >=2 grid steps when possible so DMA/compute overlap and both v7x TensorCores get work."""
    sublane = {4: 8, 2: 16, 1: 32}.get(itemsize, 8)            # packed-dtype sublane multiple
    base = (sublane * group) // math.gcd(sublane, group)        # lcm: aligned rows + whole pe rows
    d_pad = _round_up(D, 128)                                    # lane padding
    per_row = 2 * 2 * d_pad * itemsize                           # x + out tiles, double-buffered
    fixed = 2 * _round_up(D, 8) * d_pad * itemsize               # Wx resident (2 pipeline buffers)
    fixed += 2 * _round_up(num_t, 8) * d_pad * 4                 # pe window resident (f32)
    ts = max(base, (budget_bytes - fixed) // per_row)
    ts = min(ts, max(base, target_rows), _round_up(R, base))
    ts = max(base, (ts // base) * base)
    if ts >= R and R >= 2 * base:                                # force >=2 grid steps
        ts = max(base, ((R // 2) // base) * base)
    return int(ts)


def _pe_fc_kernel(x_ref, pe_ref, wx_ref, o_ref, *, group, rows_per_tile):
    """out_rows = x_rows @ Wx + repeat_interleave(pe_rows, group)   (bias already in pe_proj)."""
    tp = rows_per_tile // group
    # One fused lane-dense matmul per tile (MXU), f32 accumulation.
    acc = jnp.dot(x_ref[...], wx_ref[...], preferred_element_type=jnp.float32)    # (ts, D) f32
    # pe window is resident in VMEM; slice the tp rows this tile needs and repeat-interleave them
    # in-register. When `group` is sublane-aligned the reshape is a layout no-op.
    start = pl.multiple_of(pl.program_id(0) * tp, tp)
    pe = pe_ref[pl.ds(start, tp), :]                                               # (tp, D) f32
    d = pe.shape[-1]
    pe_rep = jnp.broadcast_to(pe[:, None, :], (tp, group, d)).reshape(rows_per_tile, d)
    # pe add + rounding stay f32 (v5e has no bf16 VPU); single dense store per tile.
    o_ref[...] = (acc + pe_rep).astype(o_ref.dtype)


def positional_encoding_forward(params, x, num_a, t_offset=0):
    """x: (S, B, D) with S = num_t * num_a — same (seq, batch, d_model) layout as PyTorch."""
    S, B, D = x.shape
    assert D == params["d_model"]
    assert S % num_a == 0, "x.shape[0] must be divisible by num_a"
    num_t = S // num_a
    group = num_a * B            # consecutive flat rows sharing one pe row ((S,B) row-major)
    R = S * B

    if isinstance(t_offset, int):
        assert 0 <= t_offset and t_offset + num_t <= params["pe_proj"].shape[0], (
            "pe window out of range (dynamic_slice would otherwise clamp silently)"
        )
    # get_pos_enc on the pre-projected table: only the (num_t, D) window ever touches the kernel —
    # no (S, 1, D) or (S*B, D) repeat is materialized in HBM.
    pe_win = lax.dynamic_slice_in_dim(params["pe_proj"], t_offset, num_t, axis=0)

    # Flatten to lane-dense 2D: one matmul + one dense store per row tile.
    x2d = x.reshape(R, D)

    ts = _pick_row_tile(R, group, num_t, D, x.dtype.itemsize)
    tp = ts // group
    grid = (pl.cdiv(R, ts),)

    # Pad the (tiny) pe window so the last tile's in-kernel slice never reads past the block.
    num_t_pad = _round_up(num_t, tp)
    if num_t_pad != num_t:
        pe_win = jnp.pad(pe_win, ((0, num_t_pad - num_t), (0, 0)))

    out2d = pl.pallas_call(
        functools.partial(_pe_fc_kernel, group=group, rows_per_tile=ts),
        out_shape=jax.ShapeDtypeStruct((R, D), x.dtype),
        grid_spec=pltpu.PrefetchScalarGridSpec(
            num_scalar_prefetch=0,
            grid=grid,
            in_specs=[
                pl.BlockSpec((ts, D), lambda i: (i, 0)),         # x rows: sublane-aligned, D on lanes
                pl.BlockSpec((num_t_pad, D), lambda i: (0, 0)),  # pre-projected pe window, resident
                # TODO(synk): pipeline_mode=pl.Buffered(1) would single-buffer the resident Wx;
                # only matters at production D (>=1024), so keep the safe default here.
                pl.BlockSpec((D, D), lambda i: (0, 0)),          # Wx, resident across the grid
            ],
            out_specs=pl.BlockSpec((ts, D), lambda i: (i, 0)),
        ),
        compiler_params=pltpu.CompilerParams(
            dimension_semantics=("parallel",),     # independent row tiles -> v7x megacore sharding
            vmem_limit_bytes=32 << 20,             # v7x scoped default; tiler budgets 20 MiB
        ),
    )(x2d, pe_win, params["wx"])

    # TODO(synk): nn.Dropout(p=0.1) is stochastic in training; eval-mode identity is used here.
    return out2d.reshape(S, B, D)


if __name__ == "__main__":
    d_model = 32
    max_t_len = 200
    num_a = 4
    num_t = 8
    S = num_t * num_a      # 32
    B = 2
    t_offset = 3

    key = jax.random.PRNGKey(0)
    kx, kw, kb = jax.random.split(key, 3)
    x = jax.random.normal(kx, (S, B, d_model), dtype=jnp.float32)
    # fc = nn.Linear(2*d_model, d_model): weight (d_model, 2*d_model), bias (d_model,)
    weight = jax.random.normal(kw, (d_model, 2 * d_model), dtype=jnp.float32) * 0.05
    bias = jax.random.normal(kb, (d_model,), dtype=jnp.float32) * 0.05

    pe_table = build_pos_enc(max_t_len, d_model)
    params = init_positional_encoding(weight, bias, pe_table)   # one-time prep

    out = positional_encoding_forward(params, x, num_a, t_offset=t_offset)
    out = jax.block_until_ready(out)

    # Pure-JAX reference of the original concat-then-linear formulation.
    pe_slice = pe_table[t_offset:num_t + t_offset]
    pe_bcast = jnp.broadcast_to(
        jnp.repeat(pe_slice, num_a, axis=0)[:, None, :], (S, B, d_model)
    )
    ref = jnp.concatenate([x, pe_bcast], axis=-1) @ weight.T + bias

    assert out.shape == (S, B, d_model)
    np.testing.assert_allclose(np.asarray(out), np.asarray(ref), rtol=1e-5, atol=2e-5)

    print("KERNEL_OK")
</pallas_src>

<mosaic_0001>
module attributes {stable_mosaic.version = 11 : i64} {
  func.func @_pe_fc_kernel(%arg0: i32, %arg1: memref<32x32xf32, #tpu.memory_space<vmem>>, %arg2: memref<8x32xf32, #tpu.memory_space<vmem>>, %arg3: memref<32x32xf32, #tpu.memory_space<vmem>>, %arg4: memref<32x32xf32, #tpu.memory_space<vmem>>) attributes {dimension_semantics = [#tpu.dimension_semantics<parallel>], iteration_bounds = array<i64: 2>, scalar_prefetch = 0 : i64, scratch_operands = 0 : i64, tpu.core_type = #tpu.core_type<tc>, window_params = [{transform_indices = @transform_0, window_bounds = array<i64: 32, 32>}, {pipeline_mode = #tpu.pipeline_mode<synchronous>, transform_indices = @transform_1, window_bounds = array<i64: 8, 32>}, {pipeline_mode = #tpu.pipeline_mode<synchronous>, transform_indices = @transform_2, window_bounds = array<i64: 32, 32>}, {transform_indices = @transform_3, window_bounds = array<i64: 32, 32>}]} {
    %c0 = arith.constant 0 : index
    %c0_0 = arith.constant 0 : index
    %0 = vector.load %arg1[%c0, %c0_0] : memref<32x32xf32, #tpu.memory_space<vmem>>, vector<32x32xf32>
    %c0_1 = arith.constant 0 : index
    %c0_2 = arith.constant 0 : index
    %1 = vector.load %arg3[%c0_1, %c0_2] : memref<32x32xf32, #tpu.memory_space<vmem>>, vector<32x32xf32>
    %cst = arith.constant dense<0.000000e+00> : vector<32x32xf32>
    %2 = tpu.matmul %0, %1, %cst {dimension_numbers = #tpu.dot_dimension_numbers<[1], [0], [0], [1], [0, 0, 1, 1], [], []>} : vector<32x32xf32>, vector<32x32xf32>, vector<32x32xf32> -> vector<32x32xf32>
    %c4_i32 = arith.constant 4 : i32
    %3 = arith.muli %arg0, %c4_i32 : i32
    %4 = tpu.assume_multiple %3, 4 : i32
    %5 = arith.index_cast %4 : i32 to index
    %c0_3 = arith.constant 0 : index
    %6 = vector.load %arg2[%5, %c0_3] : memref<8x32xf32, #tpu.memory_space<vmem>>, vector<4x32xf32>
    %7 = vector.shape_cast %6 : vector<4x32xf32> to vector<4x1x32xf32>
    %8 = vector.shape_cast %7 : vector<4x1x32xf32> to vector<4x1x32xf32>
    %9 = vector.broadcast %8 : vector<4x1x32xf32> to vector<4x8x32xf32>
    %10 = vector.shape_cast %9 : vector<4x8x32xf32> to vector<32x32xf32>
    %11 = arith.addf %2, %10 : vector<32x32xf32>
    %c0_4 = arith.constant 0 : index
    %c0_5 = arith.constant 0 : index
    %12 = vector.load %arg4[%c0_4, %c0_5] : memref<32x32xf32, #tpu.memory_space<vmem>>, vector<32x32xf32>
    tpu.vector_store %arg4[%c0_4, %c0_5], %11 {strides = array<i32>} : memref<32x32xf32, #tpu.memory_space<vmem>>, vector<32x32xf32>,
    return
  }
  func.func @transform_0(%arg0: i32) -> (i32, i32) {
    %c0_i32 = arith.constant 0 : i32
    %c0_i32_0 = arith.constant 0 : i32
    return %arg0, %c0_i32 : i32, i32
  }
  func.func @transform_1(%arg0: i32) -> (i32, i32) {
    %c0_i32 = arith.constant 0 : i32
    %c0_i32_0 = arith.constant 0 : i32
    %c0_i32_1 = arith.constant 0 : i32
    return %c0_i32, %c0_i32_0 : i32, i32
  }
  func.func @transform_2(%arg0: i32) -> (i32, i32) {
    %c0_i32 = arith.constant 0 : i32
    %c0_i32_0 = arith.constant 0 : i32
    %c0_i32_1 = arith.constant 0 : i32
    return %c0_i32, %c0_i32_0 : i32, i32
  }
  func.func @transform_3(%arg0: i32) -> (i32, i32) {
    %c0_i32 = arith.constant 0 : i32
    %c0_i32_0 = arith.constant 0 : i32
    return %arg0, %c0_i32 : i32, i32
  }
}

</mosaic_0001>

<bundles_post_ra>
// kernel: tpu_custom_call.1
= control target key start
LH: loop header
LB: loop body
LE: loop exit
PB: predicated region body
PF: predicated region fallthrough
CT: control target
= control target key end

     0   :  { %s475_s12 = smov 0   ;;  %s527_s0 = inlined_call_operand.vmem [shape: f32[64,32], index: 0, kind: input, shape index: {}]   ;;  %s528_s1 = inlined_call_operand.vmem [shape: f32[8,32], index: 1, kind: input, shape index: {}]   ;;  %s529_s2 = inlined_call_operand.vmem [shape: f32[32,32], index: 2, kind: input, shape index: {}]   ;;  %s530_s3 = inlined_call_operand.vmem [shape: f32[64,32], index: 3, kind: output, shape index: {}]  }
   0x1 LB: > { %s390_s13 = sadd.s32 4294967295, %s452_s12   ;;  %p394_p0 = scmp.ge.s32.totalorder %s452_s12, 1  ;;  %s452_s12 = sphi %s475_s12, %s13_s12  }
   0x2   : > { %p138_p1 = scmp.lt.s32.totalorder %s452_s12, 3 }
   0x4   : > { %p139_p2 = pnand %p394_p0, %p138_p1 }
   0x5   : > { %s489_s18 = sshll.u32 (!%p139_p2), %s390_s13, 2 }
   0x6   : > { %142 = sbr.rel (%p139_p2) target bundleno = 219 (0xdb), region = 32  ;;  %p163_p3 = scmp.lt.s32.totalorder (!%p139_p2), %s489_s18, 7 }
   0x7   : > { %s183_s30 = scalar_lea.vmem (!%p139_p2), %s528_s1, %s489_s18 }
   0xb   : > { %v181_v0 = vld [vmem:[%s529_s2 + $0x18] sm:$0xff]  ;;  %v180_v1 = vld [vmem:[%s529_s2 + $0x10] sm:$0xff]  ;;  %v179_v2 = vld [vmem:[%s529_s2 + $0x8] sm:$0xff]  ;;  %s496_s21 = scalar_select %p163_p3, %s489_s18, 7  ;;  %vm230_vm0 = vcmask 261120   ;;  %v197_v10 = vlaneseq }
   0xc   : > { %415 = vmatprep.subr.mxu0 %v181_v0  ;;  %429 = vmatprep.subr.mxu1 %v181_v0  ;;  %v178_v3 = vld [vmem:[%s529_s2] sm:$0xff]  ;;  %v454_v8 = vmov 1966171168  }
   0xd   : > { %416 = vmatpush3.msra.mxu0 %v181_v0  ;;  %433 = vmatpush3.msra.mxu1 %v181_v0  ;;  %s396_s24 = sshll.u32 %s496_s21, 3  ;;  %v195_v9 = vunpack.c.l.s4 %v454_v8  ;;  %v198_v12 = vshrl.u32 %v197_v10, 7  ;;  %v400_v13 = vld.sshfl [vmem:[%s183_s30] sm:$0x33 pattern:$0x75316420] }
   0xe   : > { %417 = vmatprep.subr.mxu0 %v180_v1  ;;  %430 = vmatprep.subr.mxu1 %v180_v1  ;;  %s166_s27 = scalar_lea.vmem %s527_s0, %s396_s24  ;;  %v193_v15 = vcombine.high %v400_v13, %v400_v13  ;;  %s172_s6 = scalar_lea.vmem %s530_s3, %s396_s24 }
   0xf   : > { %418 = vmatpush3.msra.mxu0 %v180_v1  ;;  %434 = vmatpush3.msra.mxu1 %v180_v1  ;;  %v174_v4 = vld [vmem:[%s166_s27] sm:$0xff]  ;;  %v176_v5 = vld [vmem:[%s166_s27 + $0x10] sm:$0xff]  ;;  %v175_v6 = vld [vmem:[%s166_s27 + $0x8] sm:$0xff]  ;;  %v196_v11 = vunpack.c.0.s8 %v195_v9  ;;  %v212_v18 = vsub.s32 0, %v198_v12 }
  0x10   : > { %419 = vmatprep.subr.mxu0 %v179_v2  ;;  %431 = vmatprep.subr.mxu1 %v179_v2  ;;  %v177_v7 = vld [vmem:[%s166_s27 + $0x18] sm:$0xff] }
  0x11   : > { %420 = vmatpush3.msra.mxu0 %v179_v2  ;;  %435 = vmatpush3.msra.mxu1 %v179_v2  ;;  %v199_v14 = vsub.s32 %v196_v11, %v198_v12 }
  0x12   : > { %421 = vmatprep.subr.mxu0 %v178_v3  ;;  %432 = vmatprep.subr.mxu1 %v178_v3 }
  0x13   : > { %422 = vmatpush3.msra.mxu0 %v178_v3  ;;  %436 = vmatpush3.msra.mxu1 %v178_v3  ;;  %v200_v16 = vrot.slane %v400_v13, %v199_v14  ;;  %v207_v17 = vrot.slane %v193_v15, %v199_v14 }
  0x14   : > { %423 = vmatprep.mubr.msk.f32.mxu0 %vm230_vm0, %v174_v4  ;;  %426 = vmatprep.mubr.msk.f32.mxu1 %vm230_vm0, %v176_v5 }
  0x15   : > { %424 = vmatmul.mubr.msk.f32.vlgmr.msra.gmra.mxu0 %vm230_vm0, %v175_v6  ;;  %427 = vmatmul.mubr.msk.f32.vlgmr.msra.gmra.mxu1 %vm230_vm0, %v177_v7  ;;  %v208_v19 = vcombine.high %v200_v16, %v200_v16  ;;  %v209_v20 = vcombine.high %v207_v17, %v207_v17  ;;  %v213_v21 = vrot.slane %v200_v16, %v212_v18 }
  0x16   : > { %v217_v22 = vrot.slane %v207_v17, %v212_v18 }
  0x17   : > { %v221_v25 = vrot.slane %v208_v19, %v212_v18  ;;  %v225_v26 = vrot.slane %v209_v20, %v212_v18 }
  0xd5   : > { %v425_v23 = vpop.f32.mrf.mxu0  ;;  %v428_v24 = vpop.f32.mrf.mxu1 }
  0xd6   : > { %v315_v30 = vadd.f32 %v425_v23, %v217_v22  ;;  %v325_v32 = vadd.f32 %v428_v24, %v225_v26 }
  0xd7   : > { %v309_v27 = vpop.f32.mrf.mxu0  ;;  %v319_v28 = vpop.f32.mrf.mxu1 }
  0xd8   : > { %v310_v29 = vadd.f32 %v309_v27, %v213_v21  ;;  %v320_v31 = vadd.f32 %v319_v28, %v221_v25  ;;  %329 = vst.msk [vmem:[%s172_s6 + $0x8] sm:$0xff] %vm230_vm0, %v315_v30  ;;  %331 = vst.msk [vmem:[%s172_s6 + $0x18] sm:$0xff] %vm230_vm0, %v325_v32 }
  0xda   : > { %328 = vst.msk [vmem:[%s172_s6] sm:$0xff] %vm230_vm0, %v310_v29  ;;  %330 = vst.msk [vmem:[%s172_s6 + $0x10] sm:$0xff] %vm230_vm0, %v320_v31 }
  0xdb PF: > { %s13_s12 = sadd.s32 1, %s452_s12  }
  0xdc   : > { %p10_p4 = scmp.ge.s32.totalorder %s13_s12, 4  }
  0xde   :  { %12 = sbr.rel (!%p10_p4) target bundleno = 1 (0x1), region = 63 }

</bundles_post_ra>
